<compile_context>
chip_gen: v7x
topology: tpu7x:2x2x1
jax: 0.10.0
libtpu: 0.0.40
codegen_flags: <defaults>
</compile_context>

<pallas_src>
import jax
import jax.numpy as jnp
from jax import lax
from jax.experimental import pallas as pl
from jax.experimental.pallas import tpu as pltpu


def _bert_embed_kernel(mask_ref, e_ref, w_ref, b_ref, out_ref, acc_ref):
    """Fused (token_mask @ e) @ W^T + b for one (batch, d-tile, out-tile) block."""
    hi = pl.program_id(3)

    @pl.when(hi == 0)
    def _():
        acc_ref[...] = jnp.zeros_like(acc_ref)

    # einsum('abc,adb->adc') per batch: (td, S) @ (S, th) -> (td, th)
    pre = lax.dot_general(
        mask_ref[0], e_ref[0],
        dimension_numbers=(((1,), (0,)), ((), ())),
        preferred_element_type=jnp.float32)

    # Linear: (td, th) @ W[t_out, th]^T -> (td, t_out), accumulated over H tiles.
    acc_ref[...] += lax.dot_general(
        pre, w_ref[...],
        dimension_numbers=(((1,), (1,)), ((), ())),
        preferred_element_type=jnp.float32)

    @pl.when(hi == pl.num_programs(3) - 1)
    def _():
        out_ref[0] = (acc_ref[...] + b_ref[...]).astype(out_ref.dtype)


def _pick_tile(dim, target, align):
    """Largest `align`-multiple divisor of `dim` that is <= target, else full dim."""
    if dim <= target:
        return dim
    t = (target // align) * align
    while t >= align:
        if dim % t == 0:
            return t
        t -= align
    return dim  # no aligned divisor: use full dim (always legal for BlockSpec)


def bert_embed_forward(e, token_mask, weight, bias, *,
                       td_target=256, tout_target=256, th_target=512):
    """JAX/Pallas equivalent of BERTEmbed.forward after the BERT encoder.

    Args:
      e:          (B, S, H)  BERT last hidden state (bert_model output [0]).
      token_mask: (B, D, S)
      weight:     (OUT, H)   nn.Linear(input_size=H, size=OUT) weight.
      bias:       (OUT,)
    Returns:
      (B, D, OUT) = einsum('abc,adb->adc', e, token_mask) @ W^T + b
    """
    B, S, H = e.shape
    Bm, D, Sm = token_mask.shape
    OUT, Hw = weight.shape
    assert Bm == B and Sm == S and Hw == H and bias.shape == (OUT,)

    td = _pick_tile(D, td_target, 8)
    t_out = _pick_tile(OUT, tout_target, 128)
    th = _pick_tile(H, th_target, 128)

    bias2d = bias.reshape(1, OUT)
    grid = (B, D // td, OUT // t_out, H // th)

    return pl.pallas_call(
        _bert_embed_kernel,
        out_shape=jax.ShapeDtypeStruct((B, D, OUT), e.dtype),
        grid_spec=pltpu.PrefetchScalarGridSpec(
            num_scalar_prefetch=0,
            grid=grid,
            in_specs=[
                pl.BlockSpec((1, td, S), lambda b, di, oi, hi: (b, di, 0)),
                pl.BlockSpec((1, S, th), lambda b, di, oi, hi: (b, 0, hi)),
                pl.BlockSpec((t_out, th), lambda b, di, oi, hi: (oi, hi)),
                pl.BlockSpec((1, t_out), lambda b, di, oi, hi: (0, oi)),
            ],
            out_specs=pl.BlockSpec((1, td, t_out),
                                   lambda b, di, oi, hi: (b, di, oi)),
            scratch_shapes=[pltpu.VMEM((td, t_out), jnp.float32)],
        ),
        compiler_params=pltpu.CompilerParams(
            dimension_semantics=("parallel", "parallel", "parallel", "arbitrary")),
    )(token_mask, e, weight, bias2d)


def _reference(e, token_mask, weight, bias):
    e2 = jnp.einsum('abc,adb->adc', e, token_mask,
                    precision=lax.Precision.HIGHEST)
    t = jnp.einsum('adc,oc->ado', e2, weight,
                   precision=lax.Precision.HIGHEST) + bias
    return t


if __name__ == "__main__":
    # Small shapes consistent with the module: (batch, seq, hidden) hidden
    # states, a (batch, d, seq) token_mask, and a Linear(hidden -> size).
    B, S, H, D, OUT = 2, 8, 256, 8, 256

    key = jax.random.PRNGKey(0)
    k1, k2, k3, k4 = jax.random.split(key, 4)

    e = jax.random.normal(k1, (B, S, H), dtype=jnp.float32)          # BERT output [0]
    token_mask = jax.random.normal(k2, (B, D, S), dtype=jnp.float32)
    weight = jax.random.normal(k3, (OUT, H), dtype=jnp.float32)      # nn.init.normal_
    bias = jax.random.normal(k4, (OUT,), dtype=jnp.float32)          # nn.init.normal_

    # Use sub-full tile targets here so the demo exercises the multi-tile grid
    # (out tiles and H reduction tiles) at small shapes.
    t = bert_embed_forward(e, token_mask, weight, bias,
                           td_target=256, tout_target=128, th_target=128)
    t = jax.block_until_ready(t)

    ref = jax.block_until_ready(_reference(e, token_mask, weight, bias))
    assert t.shape == (B, D, OUT), t.shape
    assert jnp.allclose(t, ref, rtol=1e-2, atol=1e-2), float(jnp.max(jnp.abs(t - ref)))

    print("KERNEL_OK")
</pallas_src>

<mosaic_0001>
module attributes {stable_mosaic.version = 11 : i64} {
  func.func @_bert_embed_kernel(%arg0: i32, %arg1: i32, %arg2: i32, %arg3: i32, %arg4: memref<1x8x8xf32, #tpu.memory_space<vmem>>, %arg5: memref<1x8x128xf32, #tpu.memory_space<vmem>>, %arg6: memref<128x128xf32, #tpu.memory_space<vmem>>, %arg7: memref<1x128xf32, #tpu.memory_space<vmem>>, %arg8: memref<1x8x128xf32, #tpu.memory_space<vmem>>, %arg9: memref<8x128xf32, #tpu.memory_space<vmem>>) attributes {dimension_semantics = [#tpu.dimension_semantics<parallel>, #tpu.dimension_semantics<parallel>, #tpu.dimension_semantics<parallel>, #tpu.dimension_semantics<arbitrary>], iteration_bounds = array<i64: 2, 1, 2, 2>, scalar_prefetch = 0 : i64, scratch_operands = 1 : i64, tpu.core_type = #tpu.core_type<tc>, window_params = [{transform_indices = @transform_0, window_bounds = array<i64: 1, 8, 8>}, {transform_indices = @transform_1, window_bounds = array<i64: 1, 8, 128>}, {transform_indices = @transform_2, window_bounds = array<i64: 128, 128>}, {transform_indices = @transform_3, window_bounds = array<i64: 1, 128>}, {transform_indices = @transform_4, window_bounds = array<i64: 1, 8, 128>}]} {
    %c0_i32 = arith.constant 0 : i32
    %0 = arith.cmpi eq, %arg3, %c0_i32 : i32
    %1 = arith.extui %0 : i1 to i32
    %c0_i32_0 = arith.constant 0 : i32
    %2 = arith.cmpi ne, %1, %c0_i32_0 : i32
    scf.if %2 {
      %cst_14 = arith.constant 0.000000e+00 : f32
      %16 = vector.broadcast %cst_14 : f32 to vector<8x128xf32>
      %c0_15 = arith.constant 0 : index
      %c0_16 = arith.constant 0 : index
      %17 = vector.load %arg9[%c0_15, %c0_16] : memref<8x128xf32, #tpu.memory_space<vmem>>, vector<8x128xf32>
      tpu.vector_store %arg9[%c0_15, %c0_16], %16 {strides = array<i32>} : memref<8x128xf32, #tpu.memory_space<vmem>>, vector<8x128xf32>,
    } else {
    }
    %c0 = arith.constant 0 : index
    %c0_1 = arith.constant 0 : index
    %c0_2 = arith.constant 0 : index
    %3 = vector.load %arg4[%c0, %c0_1, %c0_2] : memref<1x8x8xf32, #tpu.memory_space<vmem>>, vector<1x8x8xf32>
    %4 = vector.shape_cast %3 : vector<1x8x8xf32> to vector<8x8xf32>
    %c0_3 = arith.constant 0 : index
    %c0_4 = arith.constant 0 : index
    %c0_5 = arith.constant 0 : index
    %5 = vector.load %arg5[%c0_3, %c0_4, %c0_5] : memref<1x8x128xf32, #tpu.memory_space<vmem>>, vector<1x8x128xf32>
    %6 = vector.shape_cast %5 : vector<1x8x128xf32> to vector<8x128xf32>
    %cst = arith.constant dense<0.000000e+00> : vector<8x128xf32>
    %7 = tpu.matmul %4, %6, %cst {dimension_numbers = #tpu.dot_dimension_numbers<[1], [0], [0], [1], [0, 0, 1, 1], [], []>} : vector<8x8xf32>, vector<8x128xf32>, vector<8x128xf32> -> vector<8x128xf32>
    %c0_6 = arith.constant 0 : index
    %c0_7 = arith.constant 0 : index
    %8 = vector.load %arg9[%c0_6, %c0_7] : memref<8x128xf32, #tpu.memory_space<vmem>>, vector<8x128xf32>
    %c0_8 = arith.constant 0 : index
    %c0_9 = arith.constant 0 : index
    %9 = vector.load %arg6[%c0_8, %c0_9] : memref<128x128xf32, #tpu.memory_space<vmem>>, vector<128x128xf32>
    %cst_10 = arith.constant dense<0.000000e+00> : vector<8x128xf32>
    %10 = tpu.matmul %7, %9, %cst_10 {dimension_numbers = #tpu.dot_dimension_numbers<[1], [1], [0], [0], [0, 0, 1, 0], [], []>} : vector<8x128xf32>, vector<128x128xf32>, vector<8x128xf32> -> vector<8x128xf32>
    %11 = arith.addf %8, %10 : vector<8x128xf32>
    %c0_11 = arith.constant 0 : index
    %c0_12 = arith.constant 0 : index
    %12 = vector.load %arg9[%c0_11, %c0_12] : memref<8x128xf32, #tpu.memory_space<vmem>>, vector<8x128xf32>
    tpu.vector_store %arg9[%c0_11, %c0_12], %11 {strides = array<i32>} : memref<8x128xf32, #tpu.memory_space<vmem>>, vector<8x128xf32>,
    %c1_i32 = arith.constant 1 : i32
    %13 = arith.cmpi eq, %arg3, %c1_i32 : i32
    %14 = arith.extui %13 : i1 to i32
    %c0_i32_13 = arith.constant 0 : i32
    %15 = arith.cmpi ne, %14, %c0_i32_13 : i32
    scf.if %15 {
      %c0_14 = arith.constant 0 : index
      %c0_15 = arith.constant 0 : index
      %16 = vector.load %arg9[%c0_14, %c0_15] : memref<8x128xf32, #tpu.memory_space<vmem>>, vector<8x128xf32>
      %c0_16 = arith.constant 0 : index
      %c0_17 = arith.constant 0 : index
      %17 = vector.load %arg7[%c0_16, %c0_17] : memref<1x128xf32, #tpu.memory_space<vmem>>, vector<1x128xf32>
      %18 = vector.broadcast %17 : vector<1x128xf32> to vector<8x128xf32>
      %19 = arith.addf %16, %18 : vector<8x128xf32>
      %c0_18 = arith.constant 0 : index
      %c0_19 = arith.constant 0 : index
      %c0_20 = arith.constant 0 : index
      %20 = vector.load %arg8[%c0_18, %c0_19, %c0_20] : memref<1x8x128xf32, #tpu.memory_space<vmem>>, vector<1x8x128xf32>
      %21 = vector.shape_cast %20 : vector<1x8x128xf32> to vector<8x128xf32>
      %22 = vector.shape_cast %19 : vector<8x128xf32> to vector<1x8x128xf32>
      tpu.vector_store %arg8[%c0_18, %c0_19, %c0_20], %22 {strides = array<i32>} : memref<1x8x128xf32, #tpu.memory_space<vmem>>, vector<1x8x128xf32>,
    } else {
    }
    return
  }
  func.func @transform_0(%arg0: i32, %arg1: i32, %arg2: i32, %arg3: i32) -> (i32, i32, i32) {
    %c0_i32 = arith.constant 0 : i32
    %c0_i32_0 = arith.constant 0 : i32
    return %arg0, %arg1, %c0_i32 : i32, i32, i32
  }
  func.func @transform_1(%arg0: i32, %arg1: i32, %arg2: i32, %arg3: i32) -> (i32, i32, i32) {
    %c0_i32 = arith.constant 0 : i32
    %c0_i32_0 = arith.constant 0 : i32
    return %arg0, %c0_i32, %arg3 : i32, i32, i32
  }
  func.func @transform_2(%arg0: i32, %arg1: i32, %arg2: i32, %arg3: i32) -> (i32, i32) {
    %c0_i32 = arith.constant 0 : i32
    return %arg2, %arg3 : i32, i32
  }
  func.func @transform_3(%arg0: i32, %arg1: i32, %arg2: i32, %arg3: i32) -> (i32, i32) {
    %c0_i32 = arith.constant 0 : i32
    %c0_i32_0 = arith.constant 0 : i32
    return %c0_i32, %arg2 : i32, i32
  }
  func.func @transform_4(%arg0: i32, %arg1: i32, %arg2: i32, %arg3: i32) -> (i32, i32, i32) {
    %c0_i32 = arith.constant 0 : i32
    return %arg0, %arg1, %arg2 : i32, i32, i32
  }
}

</mosaic_0001>

<bundles_post_ra>
// kernel: tpu_custom_call.1
= control target key start
LH: loop header
LB: loop body
LE: loop exit
PB: predicated region body
PF: predicated region fallthrough
CT: control target
= control target key end

     0   :  { %s1810_s0 = inlined_call_operand.hbm [shape: f32[2,8,8], index: 0, kind: input, shape index: {}]   ;;  %s1811_s1 = inlined_call_operand.hbm [shape: f32[2,8,256], index: 1, kind: input, shape index: {}]   ;;  %s1812_s2 = inlined_call_operand.hbm [shape: f32[256,256], index: 2, kind: input, shape index: {}]   ;;  %s1813_s3 = inlined_call_operand.vmem [shape: f32[1,256], index: 3, kind: input, shape index: {}]   ;;  %s1814_s4 = inlined_call_operand.hbm [shape: f32[2,8,256], index: 4, kind: output, shape index: {}]  }
   0x1   :  { %1837 = sst [smem:[#allocation31_spill]] %s1811_s1 }
   0x2   :  { %1838 = sst [smem:[#allocation32_spill]] %s1813_s3 }
   0x3   :  { %1839 = sst [smem:[#allocation33_spill]] %s1814_s4 }
   0x4   :  { %9 = vsyncpa [#allocation4], 0 }
   0x5   :  { %11 = vsyncpa [#allocation4 + $0x1], 0 }
   0x6   :  { %12 = vsyncpa [#allocation7], 0 }
   0x7   :  { %14 = vsyncpa [#allocation7 + $0x1], 0 }
   0x8   :  { %15 = vsyncpa [#allocation5], 0 }
   0x9   :  { %17 = vsyncpa [#allocation5 + $0x1], 0  ;;  %s1312_s15 = smov 0   ;;  %s1314_s16 = smov 0  }
   0xa   :  { %s1316_s17 = smov 0   ;;  %s1318_s18 = smov 0  }
   0xb   :  { %s1320_s19 = smov 0   ;;  %s1322_s20 = smov 0  }
   0xc   :  { %s1324_s21 = smov 0   ;;  %s1326_s22 = smov 0  }
   0xd   :  { %s1328_s23 = smov 0   ;;  %s1330_s24 = smov 0  }
   0xe   :  { %s1332_s25 = smov 0   ;;  %s1334_s26 = smov 0  }
   0xf   :  { %s1336_s27 = smov 0   ;;  %s1338_s28 = smov 0  }
  0x10   :  { %s1340_s29 = smov 0   ;;  %s1342_s30 = smov 0  }
  0x11   :  { %s1344_s5 = smov 0   ;;  %s1346_s6 = smov 0  }
  0x12   :  { %s1348_s7 = smov 0  }
  0x13 LB: > { %1840 = sst [smem:[#allocation14_spill]] %s1202_s15  ;;  %s1408_s8 = sadd.s32 4294967295, %s1274_s7   ;;  %s1274_s7 = sphi %s1348_s7, %s23_s7   ;;  %s1270_s6 = sphi %s1346_s6, %s1905_s6   ;;  %s1266_s5 = sphi %s1344_s5, %s1903_s5   ;;  %s1262_s30 = sphi %s1342_s30, %s1913_s30   ;;  %s1258_s29 = sphi %s1340_s29, %s1900_s29   ;;  %s1254_s28 = sphi %s1338_s28, %s1899_s28   ;;  %s1250_s27 = sphi %s1336_s27, %s1912_s27   ;;  %s1246_s26 = sphi %s1334_s26, %s1911_s26   ;;  %s1242_s25 = sphi %s1332_s25, %s1910_s25   ;;  %s1238_s24 = sphi %s1330_s24, %s1909_s24   ;;  %s1234_s23 = sphi %s1328_s23, %s1898_s23   ;;  %s1230_s22 = sphi %s1326_s22, %s1897_s22   ;;  %s1226_s21 = sphi %s1324_s21, %s1896_s21   ;;  %s1222_s20 = sphi %s1322_s20, %s1908_s20   ;;  %s1218_s19 = sphi %s1320_s19, %s1907_s19   ;;  %s1214_s18 = sphi %s1318_s18, %s1906_s18   ;;  %s1210_s17 = sphi %s1316_s17, %s1894_s17   ;;  %s1206_s16 = sphi %s1314_s16, %s1904_s16   ;;  %s1202_s15 = sphi %s1312_s15, %s1902_s15  }
  0x14   : > { %1841 = sst [smem:[#allocation15_spill]] %s1210_s17  ;;  %s38_s10 = sadd.s32 1, %s1262_s30 }
  0x15   : > { %1842 = sst [smem:[#allocation16_spill]] %s1230_s22  ;;  %s41_s11 = sadd.s32 1, %s1266_s5 }
  0x16   : > { %1843 = sst [smem:[#allocation17_spill]] %s1234_s23  ;;  %p39_p0 = scmp.ge.s32.totalorder %s38_s10, 2 }
  0x17   : > { %1844 = sst [smem:[#allocation18_spill]] %s1250_s27  ;;  %s49_s12 = sadd.s32 1, %s1270_s6 }
  0x18   : > { %1845 = sst [smem:[#allocation19_spill]] %s1254_s28  ;;  %p1830_p1 = scmp.eq.s32.totalorder %s1274_s7, 0 }
  0x19   : > { %1846 = sst [smem:[#allocation20_spill]] %s1258_s29  ;;  %p1829_p2 = scmp.eq.s32.totalorder %s1408_s8, 0 }
  0x1a   : > { %1847 = sst [smem:[#allocation21_spill]] %s1266_s5  ;;  %s1915_s10 = smov (%p39_p0, %s38_s10), 0 }
  0x1b   : > { %1848 = sst [smem:[#allocation22_spill]] %s1270_s6  ;;  %s1917_s11 = smov (!%p39_p0, %s41_s11), %s1266_s5 }
  0x1c   : > { %1849 = sst [smem:[#allocation23_spill]] %s1915_s10  ;;  %s82_s13 = ssub.s32 %s1262_s30, %s1915_s10 }
  0x1d   : > { %s86_s14 = sadd.s32 1, %s1234_s23  ;;  %p43_p3 = scmp.ge.s32.totalorder %s1917_s11, 2 }
  0x1e   : > { %p93_p4 = scmp.ne.s32.totalorder %s1234_s23, %s1230_s22  ;;  %p99_p5 = scmp.ne.s32.totalorder %s1230_s22, %s1226_s21 }
  0x1f   : > { %s114_s9 = sadd.s32 1, %s1222_s20  ;;  %s1919_s11 = smov (%p43_p3, %s1917_s11), 0 }
  0x20   : > { %1850 = sst [smem:[#allocation24_spill]] %s1919_s11  ;;  %s1921_s12 = smov (!%p43_p3, %s49_s12), %s1270_s6 }
  0x21   : > { %p1432_p6 = por %p93_p4, %p1830_p1  ;;  %p1438_p7 = por %p99_p5, %p1829_p2 }
  0x22   : > { %p51_p8 = scmp.ge.s32.totalorder %s1921_s12, 2  ;;  %s109_s21 = ssub.s32 %s1266_s5, %s1919_s11 }
  0x23   : > { %s1852_s10 = scalar_select %p1438_p7, 1, 0 }
  0x24   : > { %s111_s29 = sor.u32 %s109_s21, %s82_s13  ;;  %p121_p9 = scmp.ne.s32.totalorder %s1222_s20, %s1218_s19 }
  0x25   : > { %1853 = sst [smem:[#allocation25_spill]] %s1852_s10  ;;  %s1923_s12 = smov (%p51_p8, %s1921_s12), 0 }
  0x26   : > { %1854 = sst [smem:[#allocation26_spill]] %s1923_s12  ;;  %p112_p10 = scmp.eq.s32.totalorder %s111_s29, 0 }
  0x27   : > { %p1450_p11 = por %p121_p9, %p1830_p1  ;;  %s1456_s3 = ssub.s32 %s1270_s6, %s1923_s12 }
  0x28   : > { %p127_p12 = scmp.ne.s32.totalorder %s1218_s19, %s1214_s18  ;;  %s83_s11 = sor.u32 %s82_s13, %s1456_s3 }
  0x29   : > { %s167_s28 = sor.u32 %s109_s21, %s1456_s3  ;;  %p84_p13 = scmp.eq.s32.totalorder %s83_s11, 0 }
  0x2a   : > { %p1464_p0 = por %p127_p12, %p1829_p2  ;;  %p168_p3 = scmp.eq.s32.totalorder %s167_s28, 0 }
  0x2b   : > { %s1469_s10 = scalar_select %p112_p10, %s1222_s20, %s114_s9  }
  0x2c   : > { %s1856_s29 = scalar_select %p1464_p0, 1, 0 }
  0x2d   : > { %1857 = sst [smem:[#allocation27_spill]] %s1469_s10  ;;  %s170_s22 = sadd.s32 1, %s1210_s17 }
  0x2e   : > { %s1472_s12 = scalar_select %p84_p13, %s1234_s23, %s86_s14  }
  0x2f   : > { %p180_p4 = scmp.ne.s32.totalorder %s1210_s17, %s1206_s16  ;;  %p181_p5 = scmp.eq.s32.totalorder %s1408_s8, 7 }
  0x30   : > { %1858 = sst [smem:[#allocation28_spill]] %s1472_s12  ;;  %p186_p9 = scmp.ne.s32.totalorder %s1206_s16, %s1202_s15 }
  0x31   : > { %s1479_s18 = scalar_select %p168_p3, %s1210_s17, %s170_s22  }
  0x32   : > { %p1481_p8 = por %p181_p5, %p180_p4  ;;  %s1862_s13 = sadd.s32 4294967294, %s1274_s7  }
  0x33   : > { %1859 = sst [smem:[#allocation29_spill]] %s1479_s18  ;;  %p187_p10 = scmp.eq.s32.totalorder %s1862_s13, 7 }
  0x34   : > { %s1860_s11 = scalar_select %p1481_p8, 1, 0 }
  0x35   : > { %p1828_p12 = scmp.lt.s32.totalorder %s1274_s7, 8  ;;  %s226_s28 = sand.u32 1, %s1274_s7  }
  0x36   : > { %1861 = sst [smem:[#allocation30_spill]] %s1860_s11  ;;  %p1491_p13 = por %p187_p10, %p186_p9 }
  0x37   : > { %s228_s22 = sand.u32 1, %s1234_s23   ;;  %s703_s14 = sshll.u32 %s1270_s6, 1 }
  0x38   : > { %s1863_s9 = scalar_select %p1491_p13, 1, 0 }
  0x39   : > { %s702_s21 = sshll.u32 %s228_s22, 3  ;;  %s235_s12 = sadd.s32 %s1262_s30, %s703_s14 }
  0x3a   : > { %s704_s10 = sshll.u32 %s235_s12, 7  ;;  %s1864_s1 = sld [smem:[#allocation31_spill]] }
  0x3b   : > { %s230_s13 = scalar_lea.vmem [#allocation6], %s702_s21  ;;  %p1509_p3 = pnand %p1828_p12, %p1432_p6 }
  0x3c   : > { %s239_s11 = sshll.u32 %s230_s13, 4  ;;  %s723_s12 = sshll.u32 %s1266_s5, 5  ;;  %s1503_s11 = int_to_ptr.vmem [resolvable:$true] %s239_s11 }
  0x3d   : > { %p1518_p4 = pnand %p1828_p12, %p1450_p11  ;;  %s1525_s18 = scalar_lea.sflag [#allocation7], %s226_s28 }
  0x3e   : > { %p992_p6 = pneg %p1509_p3 }
  0x40   : > { %s1501_s15 = scalar_lea.hbm %s1864_s1, %s704_s10  ;;  %s1523_s10 = sadd.s32 %s1262_s30, %s723_s12 }
  0x41   : > { %s990_s22 = scalar_lea.hbm %s1501_s15, 128  ;;  %s995_s27 = scalar_lea.hbm %s1864_s1, 512 }
  0x42   : > { %p991_p5 = scmp.ne.s32.totalorder %s1501_s15, %s990_s22  ;;  %p996_p11 = scmp.lt.u32.totalorder %s1501_s15, %s1864_s1 }
  0x43   : > { %p997_p12 = scmp.lt.u32.totalorder %s995_s27, %s990_s22  ;;  %p999_p1 = scmp.lt.u32.totalorder %s990_s22, %s1501_s15 }
  0x44   : > { %p993_p9 = pnand %p992_p6, %p991_p5 }
  0x45   : > { %p998_p2 = por %p997_p12, %p996_p11 }
  0x46   : > { %p994_p10 = pneg %p993_p9 }
  0x47   : > { %p1000_p13 = por %p999_p1, %p998_p2 }
  0x49   : > { %p1001_p8 = pnand %p1000_p13, %p994_p10 }
  0x4b   : > { %1004 = shalt.err (!%p1001_p8)
}
  0x4c   : > { %s1005_s28 = scalar_lea.vmem %s1503_s11, 128  ;;  %s1276_s12 = smov [#allocation6]  }
  0x4d   : > { %p1006_p5 = scmp.ne.s32.totalorder %s1503_s11, %s1005_s28  ;;  %s1010_s4 = sshll.u32 %s1276_s12, 4  ;;  %s1011_s4 = int_to_ptr.vmem [resolvable:$false] %s1010_s4 }
  0x4e   : > { %s1012_s14 = scalar_lea.vmem %s1011_s4, 256  ;;  %p1013_p7 = scmp.lt.s32.totalorder %s1503_s11, %s1011_s4 }
  0x4f   : > { %p1008_p9 = pnand %p1006_p5, %p992_p6  ;;  %p1014_p12 = scmp.lt.s32.totalorder %s1012_s14, %s1005_s28 }
  0x51   : > { %p1009_p0 = pneg %p1008_p9  ;;  %p1015_p11 = por %p1014_p12, %p1013_p7 }
  0x53   : > { %p1016_p1 = pnand %p1015_p11, %p1009_p0 }
  0x55   : > { %1019 = shalt.err (!%p1016_p1)
}
  0x56   : > { %821 = dma.hbm_to_vmem [thread:$0]  (!%p1509_p3), %s1501_s15, 128, %s1503_s11, %s1525_s18  }
  0x57   : > { %s708_s22 = sshll.u32 %s1523_s10, 7  ;;  %p709_p2 = scmp.ge.s32.totalorder %s1274_s7, 1 }
  0x58   : > { %s1557_s21 = scalar_lea.hbm %s1812_s2, %s708_s22  ;;  %p273_p7 = scmp.lt.s32.totalorder %s1274_s7, 9 }
  0x59   : > { %p56_p8 = scmp.eq.s32.totalorder %s1456_s3, 0  ;;  %s58_s28 = sadd.s32 1, %s1246_s26 }
  0x5a   : > { %p1561_p0 = pnand %p709_p2, %p273_p7  ;;  %p65_p13 = scmp.ne.s32.totalorder %s1246_s26, %s1242_s25 }
  0x5b   : > { %p71_p6 = scmp.ne.s32.totalorder %s1242_s25, %s1238_s24  ;;  %p1868_p3 = scmp.eq.s32.totalorder %s1274_s7, 0 }
  0x5c   : > { %s1867_s13 = scalar_select %p1561_p0, 1, 0 }
  0x5d   : > { %s1572_s12 = scalar_select %p56_p8, %s1246_s26, %s58_s28  }
  0x5e   : > { %p67_p10 = por %p1868_p3, %p65_p13  ;;  %p1869_p5 = scmp.eq.s32.totalorder %s1408_s8, 0 }
  0x5f   : > { %s207_s11 = sand.u32 1, %s1246_s26   ;;  %s701_s10 = sshll.u32 %s1270_s6, 7 }
  0x60   : > { %p1578_p9 = por %p1869_p5, %p71_p6  ;;  %s700_s4 = sshll.u32 %s207_s11, 3 }
  0x61   : > { %s1587_s23 = scalar_lea.hbm %s1810_s0, %s701_s10  ;;  %s211_s3 = scalar_lea.vmem [#allocation3], %s700_s4 }
  0x62   : > { %s1870_s15 = scalar_select %p1578_p9, 1, 0 }
  0x63   : > { %s219_s24 = sshll.u32 %s211_s3, 4  ;;  %p1871_p12 = scmp.lt.s32.totalorder %s1274_s7, 8  ;;  %s1595_s24 = int_to_ptr.vmem [resolvable:$true] %s219_s24 }
  0x64   : > { %s248_s28 = sand.u32 1, %s1222_s20   ;;  %s208_s10 = scalar_lea.sflag [#allocation4], %s207_s11 }
  0x65   : > { %p1591_p11 = pnand %p1871_p12, %p67_p10  ;;  %s1598_s1 = sshll.u32 %s248_s28, 7 }
  0x66   : > { %s1020_s14 = scalar_lea.hbm %s1587_s23, 128  ;;  %s1025_s3 = scalar_lea.hbm %s1810_s0, 256 }
  0x67   : > { %p1021_p1 = scmp.ne.s32.totalorder %s1587_s23, %s1020_s14  ;;  %p1022_p2 = pneg %p1591_p11 }
  0x68   : > { %p1026_p13 = scmp.lt.u32.totalorder %s1587_s23, %s1810_s0  ;;  %p1027_p6 = scmp.lt.u32.totalorder %s1025_s3, %s1020_s14 }
  0x69   : > { %p1023_p7 = pnand %p1022_p2, %p1021_p1  ;;  %p1029_p10 = scmp.lt.u32.totalorder %s1020_s14, %s1587_s23 }
  0x6a   : > { %p1028_p3 = por %p1027_p6, %p1026_p13 }
  0x6b   : > { %p1024_p8 = pneg %p1023_p7 }
  0x6c   : > { %p1030_p5 = por %p1029_p10, %p1028_p3 }
  0x6e   : > { %p1031_p12 = pnand %p1030_p5, %p1024_p8 }
  0x70   : > { %1034 = shalt.err (!%p1031_p12)
}
  0x71   : > { %s1035_s11 = scalar_lea.vmem %s1595_s24, 128  ;;  %s1277_s28 = smov [#allocation3]  }
  0x72   : > { %p1036_p1 = scmp.ne.s32.totalorder %s1595_s24, %s1035_s11  ;;  %s1040_s4 = sshll.u32 %s1277_s28, 4  ;;  %s1041_s4 = int_to_ptr.vmem [resolvable:$false] %s1040_s4 }
  0x73   : > { %s1042_s5 = scalar_lea.vmem %s1041_s4, 256  ;;  %p1043_p0 = scmp.lt.s32.totalorder %s1595_s24, %s1041_s4 }
  0x74   : > { %p1038_p7 = pnand %p1036_p1, %p1022_p2  ;;  %p1044_p13 = scmp.lt.s32.totalorder %s1042_s5, %s1035_s11 }
  0x76   : > { %p1039_p9 = pneg %p1038_p7  ;;  %p1045_p6 = por %p1044_p13, %p1043_p0 }
  0x78   : > { %p1046_p3 = pnand %p1045_p6, %p1039_p9 }
  0x7a   : > { %1049 = shalt.err (!%p1046_p3)
}
  0x7b   : > { %818 = dma.hbm_to_vmem [thread:$0]  (!%p1591_p11), %s1587_s23, 128, %s1595_s24, %s208_s10  }
  0x7c   : > { %s250_s6 = scalar_lea.vmem [#allocation8], %s1598_s1  ;;  %s1050_s22 = scalar_lea.hbm %s1557_s21, 2048 }
  0x7d   : > { %s259_s14 = sshll.u32 %s250_s6, 4  ;;  %p1051_p0 = scmp.ne.s32.totalorder %s1557_s21, %s1050_s22  ;;  %s1626_s14 = int_to_ptr.vmem [resolvable:$true] %s259_s14 }
  0x7e   : > { %p1052_p9 = pneg %p1518_p4  ;;  %s1055_s11 = scalar_lea.hbm %s1812_s2, 8192 }
  0x7f   : > { %p1056_p11 = scmp.lt.u32.totalorder %s1557_s21, %s1812_s2  ;;  %p1057_p10 = scmp.lt.u32.totalorder %s1055_s11, %s1050_s22 }
  0x80   : > { %p1053_p2 = pnand %p1052_p9, %p1051_p0  ;;  %p1059_p12 = scmp.lt.u32.totalorder %s1050_s22, %s1557_s21 }
  0x81   : > { %p1058_p5 = por %p1057_p10, %p1056_p11 }
  0x82   : > { %p1054_p8 = pneg %p1053_p2 }
  0x83   : > { %p1060_p1 = por %p1059_p12, %p1058_p5 }
  0x85   : > { %p1061_p7 = pnand %p1060_p1, %p1054_p8 }
  0x87   : > { %1064 = shalt.err (!%p1061_p7)
}
  0x88   : > { %s1065_s1 = scalar_lea.vmem %s1626_s14, 2048  ;;  %s1278_s23 = smov [#allocation8]  }
  0x89   : > { %p1066_p13 = scmp.ne.s32.totalorder %s1626_s14, %s1065_s1  ;;  %s1070_s24 = sshll.u32 %s1278_s23, 4  ;;  %s1071_s24 = int_to_ptr.vmem [resolvable:$false] %s1070_s24 }
  0x8a   : > { %s1072_s10 = scalar_lea.vmem %s1071_s24, 4096  ;;  %p1073_p0 = scmp.lt.s32.totalorder %s1626_s14, %s1071_s24 }
  0x8b   : > { %p1068_p6 = pnand %p1066_p13, %p1052_p9  ;;  %p1074_p2 = scmp.lt.s32.totalorder %s1072_s10, %s1065_s1 }
  0x8d   : > { %p1069_p3 = pneg %p1068_p6  ;;  %p1075_p11 = por %p1074_p2, %p1073_p0 }
  0x8f   : > { %p1076_p10 = pnand %p1075_p11, %p1069_p3 }
  0x91   : > { %1079 = shalt.err (!%p1076_p10)
}
  0x92   : > { %s1279_s5 = smov 256   ;;  %s1280_s6 = smov 128  }
  0x93   : > { %s1281_s22 = smov 8   ;;  %p1873_p9 = scmp.ne.s32.totalorder %s1867_s13, 0 }
  0x94   : > { %824 = dma.hbm_to_vmem [thread:$0]  (!%p1518_p4), %s1557_s21, 2048, %s1626_s14, %s1525_s18, %s1279_s5, %s1280_s6, %s1281_s22  }
  0x95   : > { %277 = sbr.rel (%p1873_p9) target bundleno = 656 (0x290), region = 36  ;;  %s279_s27 = sand.u32 (!%p1873_p9), 1, %s1242_s25  }
  0x96   : > { %s1657_s3 = sshll.u32 (!%p1873_p9), %s279_s27, 3  ;;  %s280_s11 = scalar_lea.sflag (!%p1873_p9), [#allocation4], %s279_s27 }
  0x97   : > { %s283_s28 = scalar_lea.vmem (!%p1873_p9), [#allocation3], %s1657_s3  ;;  %p1874_p8 = scmp.ne.s32.totalorder (!%p1873_p9), %s1870_s15, 0 }
  0x9c   : > { %1185 = dma.done.wait (%p1874_p8), %s280_s11, 128  }
  0x9d   : > { %1187 = vsyncadd (%p1874_p8), %s280_s11, 4294967168  ;;  %s1875_s4 = sld [smem:[#allocation16_spill]]  ;;  %s1876_s17 = sld [smem:[#allocation25_spill]] }
  0x9e   : > { %s288_s18 = sand.u32 1, %s1408_s8  }
  0x9f   : > { %s289_s14 = scalar_lea.sflag [#allocation7], %s288_s18 }
  0xa3   : > { %s290_s21 = sand.u32 1, %s1875_s4   ;;  %p1877_p4 = scmp.ne.s32.totalorder %s1876_s17, 0 }
  0xa4   : > { %s711_s13 = sshll.u32 %s290_s21, 3 }
  0xa5   : > { %s292_s1 = scalar_lea.vmem [#allocation6], %s711_s13 }
  0xa6   : > { %1189 = dma.done.wait (%p1877_p4), %s289_s14, 128  }
  0xa7   : > { %1191 = vsyncadd (%p1877_p4), %s289_s14, 4294967168  ;;  %s299_s23 = sand.u32 1, %s1218_s19   ;;  %p1878_p5 = scmp.ne.s32.totalorder %s1856_s29, 0 }
  0xa8   : > { %s712_s24 = sshll.u32 %s299_s23, 7 }
  0xa9   : > { %s1671_s10 = scalar_lea.vmem [#allocation8], %s712_s24 }
  0xaa   : > { %1193 = dma.done.wait (%p1878_p5), %s289_s14, 2048  }
  0xab   : > { %1195 = vsyncadd (%p1878_p5), %s289_s14, 4294965248  ;;  %s1879_s8 = sld [smem:[#allocation19_spill]]  ;;  %s336_s15 = sand.u32 1, %s1206_s16  }
  0xac   : > { %s1681_s5 = sshll.u32 %s336_s15, 3  ;;  %s1880_s27 = sld [smem:[#allocation32_spill]] }
  0xad   : > { %s338_s11 = scalar_lea.vmem [#allocation9], %s1681_s5  ;;  %s1881_s29 = sld [smem:[#allocation18_spill]] }
  0xb1   : > { %p340_p12 = scmp.lt.s32.totalorder %s1879_s8, 1 }
  0xb3   : > { %s1925_s8 = smov (!%p340_p12, %s1879_s8), 1  ;;  %p714_p1 = scmp.ne.s32.totalorder %s1881_s29, 0 }
  0xb4   : > { %s342_s3 = scalar_lea.vmem %s1880_s27, %s1925_s8  ;;  %v1282_v0 = vmov (!%p714_p1), 0.0  }
  0xb5   : > { %346 = sbr.rel (%p714_p1) target bundleno = 188 (0xbc), region = 52  ;;  %347 = vst [vmem:[#allocation2] sm:$0xff] (!%p714_p1), %v1282_v0 }
  0xbc PF: > { %v349_v1 = vld [vmem:[%s292_s1] sm:$0xff]  ;;  %v348_v2 = vld [vmem:[%s283_s28] sm:$0xff]  ;;  %vm350_vm0 = vcmask 64512   ;;  %v1283_v3 = vmov 0.0   ;;  %vm1284_vm1 = vmmov 0   ;;  %v1285_v6 = vmov 0.0|0.0  }
  0xbd   : > { %743 = vmatprep.subr.mxu0 %v1283_v3  ;;  %745 = vmatprep.mubr.msk.f32.mxu0 %vm1284_vm1, %v1283_v3  ;;  %v425_v4 = vld [vmem:[%s1671_s10] sm:$0xff]  ;;  %v426_v5 = vld [vmem:[%s1671_s10 + $0x8] sm:$0xff]  ;;  %v427_v8 = vld [vmem:[%s1671_s10 + $0x10] sm:$0xff]  ;;  %s1882_s28 = sld [smem:[#allocation18_spill]] }
  0xbe   : > { %744 = vmatpush3.msra.mxu0 %v349_v1  ;;  %783 = vmatprep.subr.bf16.mxu1 %v1285_v6  ;;  %v784_v7 = vpack.c.bf16 %v426_v5, %v425_v4  ;;  %v428_v9 = vld [vmem:[%s1671_s10 + $0x18] sm:$0xff]  ;;  %v429_v11 = vld [vmem:[%s1671_s10 + $0x20] sm:$0xff]  ;;  %v430_v12 = vld [vmem:[%s1671_s10 + $0x28] sm:$0xff] }
  0xbf   : > { %746 = vmatmul.mubr.msk.f32.vlgmr.msra.gmra.mrb[0].mxu0 %vm350_vm0, %v348_v2  ;;  %780 = vmatprep.mubr.msk.f32.mxu1 %vm1284_vm1, %v1283_v3  ;;  %v787_v10 = vpack.c.bf16 %v428_v9, %v427_v8  ;;  %v790_v13 = vpack.c.bf16 %v430_v12, %v429_v11  ;;  %v431_v14 = vld [vmem:[%s1671_s10 + $0x30] sm:$0xff]  ;;  %v432_v15 = vld [vmem:[%s1671_s10 + $0x38] sm:$0xff]  ;;  %v433_v17 = vld [vmem:[%s1671_s10 + $0x40] sm:$0xff] }
  0xc0   : > { %785 = vmatpush3.bf16.xpose.msra.mxu1 %v784_v7  ;;  %v793_v16 = vpack.c.bf16 %v432_v15, %v431_v14  ;;  %v434_v18 = vld [vmem:[%s1671_s10 + $0x48] sm:$0xff]  ;;  %v435_v20 = vld [vmem:[%s1671_s10 + $0x50] sm:$0xff]  ;;  %v436_v21 = vld [vmem:[%s1671_s10 + $0x58] sm:$0xff] }
  0xc1   : > { %786 = vmatprep.subr.bf16.mxu1 %v1285_v6  ;;  %v796_v19 = vpack.c.bf16 %v434_v18, %v433_v17  ;;  %v799_v22 = vpack.c.bf16 %v436_v21, %v435_v20  ;;  %v437_v23 = vld [vmem:[%s1671_s10 + $0x60] sm:$0xff]  ;;  %v438_v24 = vld [vmem:[%s1671_s10 + $0x68] sm:$0xff]  ;;  %v439_v26 = vld [vmem:[%s1671_s10 + $0x70] sm:$0xff] }
  0xc2   : > { %v802_v25 = vpack.c.bf16 %v438_v24, %v437_v23  ;;  %v440_v27 = vld [vmem:[%s1671_s10 + $0x78] sm:$0xff] }
  0xc3   : > { %v805_v28 = vpack.c.bf16 %v440_v27, %v439_v26  ;;  %v424_v31 = vld [vmem:[#allocation2] sm:$0xff]  ;;  %p716_p7 = scmp.ne.s32.totalorder %s1882_s28, 1 }
  0xc4   : > { %v717_v36 = vld [vmem:[%s342_s3] ss:$0 sm:$0xff] (!%p716_p7) }
  0xc8   : > { %788 = vmatpush3.bf16.xpose.msra.mxu1 %v787_v10 }
  0xc9   : > { %789 = vmatprep.subr.bf16.mxu1 %v1285_v6 }
  0xd0   : > { %791 = vmatpush3.bf16.xpose.msra.mxu1 %v790_v13 }
  0xd1   : > { %792 = vmatprep.subr.bf16.mxu1 %v1285_v6 }
  0xd8   : > { %794 = vmatpush3.bf16.xpose.msra.mxu1 %v793_v16 }
  0xd9   : > { %795 = vmatprep.subr.bf16.mxu1 %v1285_v6 }
  0xe0   : > { %797 = vmatpush3.bf16.xpose.msra.mxu1 %v796_v19 }
  0xe1   : > { %798 = vmatprep.subr.bf16.mxu1 %v1285_v6 }
  0xe8   : > { %800 = vmatpush3.bf16.xpose.msra.mxu1 %v799_v22 }
  0xe9   : > { %801 = vmatprep.subr.bf16.mxu1 %v1285_v6 }
  0xf0   : > { %803 = vmatpush3.bf16.xpose.msra.mxu1 %v802_v25 }
  0xf1   : > { %804 = vmatprep.subr.bf16.mxu1 %v1285_v6 }
  0xf8   : > { %806 = vmatpush3.bf16.xpose.msra.mxu1 %v805_v28 }
 0x192   : > { %v420_v29 = vpop.f32.mrb[0].mxu0 }
 0x193   : > { %v747_v30 = vpop.f32.mrb[1].mxu0  ;;  %781 = vmatmul.mubr.f32.vlgmr.msra.gmra.mrb[0].mxu1 %v420_v29 }
 0x263   : > { %516 = sbr.rel (%p716_p7) target bundleno = 628 (0x274), region = 56 }
 0x266   : > { %v507_v32 = vpop.f32.mrb[0].mxu1 }
 0x267   : > { %v511_v33 = vadd.f32 %v507_v32, %v424_v31  ;;  %v782_v34 = vpop.f32.mrb[1].mxu1 }
 0x269   : > { %512 = vst [vmem:[#allocation2] sm:$0xff] %v511_v33 }
 0x270   : > { %v517_v35 = vld [vmem:[#allocation2] sm:$0xff] }
 0x271   : > { %v525_v37 = vadd.f32 %v717_v36, %v517_v35 }
 0x273   : > { %526 = vst [vmem:[%s338_s11] sm:$0xff] %v525_v37 }
 0x274 PF: > { %s1884_s21 = sld [smem:[#allocation20_spill]]  ;;  %s1885_s13 = sld [smem:[#allocation19_spill]] }
 0x275   : > { %s1886_s14 = sld [smem:[#allocation30_spill]]  ;;  %s545_s24 = sshll.u32 %s338_s11, 4  ;;  %s1720_s24 = int_to_ptr.vmem [resolvable:$true] %s545_s24 }
 0x276   : > { %s1887_s22 = sld [smem:[#allocation33_spill]]  ;;  %s528_s3 = scalar_lea.sflag [#allocation5], %s336_s15 }
 0x277   : > { %s1080_s29 = scalar_lea.vmem %s1720_s24, 128  ;;  %s1286_s28 = smov [#allocation9]  }
 0x278   : > { %p1081_p13 = scmp.ne.s32.totalorder %s1720_s24, %s1080_s29  ;;  %s1084_s5 = sshll.u32 %s1286_s28, 4  ;;  %s1085_s5 = int_to_ptr.vmem [resolvable:$false] %s1084_s5 }
 0x279   : > { %s1086_s11 = scalar_lea.vmem %s1085_s5, 256  ;;  %p1087_p2 = scmp.lt.s32.totalorder %s1720_s24, %s1085_s5 }
 0x27a   : > { %s719_s1 = sshll.u32 %s1884_s21, 1  ;;  %p1088_p11 = scmp.lt.s32.totalorder %s1086_s11, %s1080_s29 }
 0x27b   : > { %s541_s23 = sadd.s32 %s1885_s13, %s719_s1  ;;  %p1889_p6 = scmp.ne.s32.totalorder %s1886_s14, 0 }
 0x27c   : > { %s720_s10 = sshll.u32 %s541_s23, 7  ;;  %s1888_s4 = smov %s1887_s22 }
 0x27d   : > { %s543_s27 = scalar_lea.hbm %s1887_s22, %s720_s10  ;;  %p1082_p3 = pnand %p1081_p13, %p1889_p6 }
 0x27e   : > { %p1089_p10 = por %p1088_p11, %p1087_p2 }
 0x27f   : > { %p1083_p0 = pneg %p1082_p3 }
 0x281   : > { %p1090_p9 = pnand %p1089_p10, %p1083_p0 }
 0x283   : > { %1093 = shalt.err (!%p1090_p9)
}
 0x284   : > { %s1094_s17 = scalar_lea.hbm %s543_s27, 128  ;;  %s1098_s21 = scalar_lea.hbm %s1888_s4, 512 }
 0x285   : > { %p1095_p8 = scmp.ne.s32.totalorder %s543_s27, %s1094_s17  ;;  %p1099_p12 = scmp.lt.u32.totalorder %s543_s27, %s1888_s4 }
 0x286   : > { %p1100_p1 = scmp.lt.u32.totalorder %s1098_s21, %s1094_s17  ;;  %p1102_p13 = scmp.lt.u32.totalorder %s1094_s17, %s543_s27 }
 0x287   : > { %p1096_p4 = pnand %p1095_p8, %p1889_p6 }
 0x288   : > { %p1101_p7 = por %p1100_p1, %p1099_p12 }
 0x289   : > { %p1097_p5 = pneg %p1096_p4 }
 0x28a   : > { %p1103_p3 = por %p1102_p13, %p1101_p7 }
 0x28c   : > { %p1104_p0 = pnand %p1103_p3, %p1097_p5 }
 0x28e   : > { %1107 = shalt.err (!%p1104_p0)
}
 0x28f   : > { %813 = dma.vmem_to_hbm [thread:$0]  (%p1889_p6), %s1720_s24, 128, %s543_s27, %s528_s3  }
 0x290 PF: > { %s1890_s23 = sld [smem:[#allocation14_spill]]  ;;  %p830_p2 = scmp.ge.s32.totalorder %s1274_s7, 2 }
 0x291   : > { %p1891_p11 = scmp.ne.s32.totalorder %s1863_s9, 0 }
 0x293   : > { %p826_p10 = pnand %p830_p2, %p1891_p11 }
 0x296   : > { %s557_s10 = sand.u32 1, %s1890_s23  }
 0x297   : > { %s558_s6 = scalar_lea.sflag [#allocation5], %s557_s10 }
 0x298   : > { %1197 = dma.done.wait (!%p826_p10), %s558_s6, 128  }
 0x299   : > { %1199 = vsyncadd (!%p826_p10), %s558_s6, 4294967168  ;;  %s23_s7 = sadd.s32 1, %s1274_s7   ;;  %s1893_s14 = sld [smem:[#allocation15_spill]] }
 0x29a   : > { %p1748_p9 = scmp.ge.s32.totalorder %s23_s7, 10   ;;  %s1894_s17 = sld [smem:[#allocation29_spill]] }
 0x29b   : > { %s1895_s24 = sld [smem:[#allocation27_spill]]  ;;  %s1896_s21 = sld [smem:[#allocation16_spill]] }
 0x29c   : > { %s1897_s22 = sld [smem:[#allocation17_spill]]  ;;  %s1898_s23 = sld [smem:[#allocation28_spill]] }
 0x29d   : > { %s1899_s28 = sld [smem:[#allocation21_spill]]  ;;  %s1900_s29 = sld [smem:[#allocation22_spill]] }
 0x29e   : > { %s1901_s9 = sld [smem:[#allocation23_spill]]  ;;  %s1902_s15 = smov %s1206_s16 }
 0x29f   : > { %s1903_s5 = sld [smem:[#allocation24_spill]]  ;;  %s1904_s16 = smov %s1893_s14 }
 0x2a0   : > { %s1905_s6 = sld [smem:[#allocation26_spill]]  ;;  %s1906_s18 = smov %s1218_s19 }
 0x2a1   : > { %s1907_s19 = smov %s1222_s20  ;;  %s1908_s20 = smov %s1895_s24 }
 0x2a2   : > { %s1909_s24 = smov %s1242_s25  ;;  %s1910_s25 = smov %s1246_s26 }
 0x2a3   : > { %s1911_s26 = smov %s1572_s12  ;;  %s1912_s27 = smov %s1262_s30 }
 0x2a4   : > { %s1913_s30 = smov %s1901_s9  ;;  %22 = sbr.rel (!%p1748_p9) target bundleno = 19 (0x13), region = 116 }
 0x2ab   :  { %563 = vsyncpa [#allocation4], 1 }
 0x2ac   :  { %565 = vsyncpa [#allocation4 + $0x1], 1 }
 0x2ad   :  { %566 = vsyncpa [#allocation7], 1 }
 0x2ae   :  { %568 = vsyncpa [#allocation7 + $0x1], 1 }
 0x2af   :  { %569 = vsyncpa [#allocation5], 1 }
 0x2b0   :  { %571 = vsyncpa [#allocation5 + $0x1], 1 }

</bundles_post_ra>
